<compile_context>
chip_gen: v7x
topology: tpu7x:2x2x1
jax: 0.10.0
libtpu: 0.0.40
codegen_flags: <defaults>
</compile_context>

<pallas_src>
import functools

import jax
import jax.numpy as jnp
import numpy as np
from jax.experimental import pallas as pl
from jax.experimental.pallas import tpu as pltpu


def _round_up(x, m):
    return ((x + m - 1) // m) * m


def _alpha_loss_kernel(p_ref, g_ref, out_ref, acc_ref, *, chunk, valid_lanes, masked):
    # Grid = (slab, k): slab is "parallel" (megacore), k is the lane-tile
    # reduction axis ("arbitrary", last by convention).
    k = pl.program_id(1)

    @pl.when(k == 0)
    def _():
        acc_ref[...] = jnp.zeros_like(acc_ref)

    # Hot path: pure elementwise work + lane-dense accumulator update.
    diff = g_ref[...] - p_ref[...]
    sq = diff * diff
    if masked:
        # Last lane-tile runs past the valid extent; zero those lanes.
        # (Undefined OOB data is discarded by the select, so NaN/Inf is fine.)
        lane = k * chunk + jax.lax.broadcasted_iota(jnp.int32, sq.shape, 1)
        sq = jnp.where(lane < valid_lanes, sq, jnp.float32(0.0))
    acc_ref[...] += sq

    # Finalize this slab: one cross-lane reduction, one wide store.
    @pl.when(k == pl.num_programs(1) - 1)
    def _():
        out_ref[...] = jnp.broadcast_to(jnp.sum(acc_ref[...]), out_ref.shape)


def alpha_loss_pallas(p_mask, gt_mask, eps=1e-6, max_chunk=32768, num_slabs=2):
    """p_mask, gt_mask: float arrays of identical shape (N, C, H, W)."""
    assert p_mask.shape == gt_mask.shape
    n_batch = p_mask.shape[0]
    total = int(np.prod(p_mask.shape))

    p = p_mask.reshape(-1).astype(jnp.float32)
    g = gt_mask.reshape(-1).astype(jnp.float32)

    rows = 8 * num_slabs  # full sublane occupancy per slab
    total_r = _round_up(total, rows)
    if total_r != total:
        # Rare ragged case (total not a multiple of 16).  Zero padding is an
        # exact no-op for (g - p)^2; cost is one extra copy of each input.
        pad = total_r - total
        p = jnp.pad(p, (0, pad))
        g = jnp.pad(g, (0, pad))

    d = total_r // rows                       # lanes per row
    chunk = min(int(max_chunk), _round_up(d, 128))  # lane-tile, multiple of 128
    steps = -(-d // chunk)                    # cdiv(d, chunk)
    masked = (d % chunk) != 0                 # in-kernel tail mask needed?

    p2 = p.reshape(rows, d)
    g2 = g.reshape(rows, d)

    in_spec = pl.BlockSpec((8, chunk), lambda s, k: (s, k))
    out_spec = pl.BlockSpec((1, 1, 128), lambda s, k: (s, 0, 0))

    kernel = functools.partial(
        _alpha_loss_kernel, chunk=chunk, valid_lanes=d, masked=masked)

    partials = pl.pallas_call(
        kernel,
        out_shape=jax.ShapeDtypeStruct((num_slabs, 1, 128), jnp.float32),
        grid_spec=pltpu.PrefetchScalarGridSpec(
            num_scalar_prefetch=0,
            grid=(num_slabs, steps),
            in_specs=[in_spec, in_spec],
            out_specs=out_spec,
            scratch_shapes=[pltpu.VMEM((8, chunk), jnp.float32)],
        ),
        compiler_params=pltpu.CompilerParams(
            dimension_semantics=("parallel", "arbitrary"),
        ),
    )(p2, g2)

    # Tiny JAX epilogue: combine per-slab partial sums, mean over batch, sqrt.
    image_loss_sum = jnp.sum(partials[:, 0, 0])
    return jnp.sqrt(image_loss_sum / jnp.float32(n_batch) + jnp.float32(eps))


def _reference(p_mask, gt_mask, eps=1e-6):
    # Pure-numpy reference mirroring the PyTorch forward.
    sqr_diff = (np.asarray(gt_mask, np.float32) - np.asarray(p_mask, np.float32)) ** 2
    image_loss = sqr_diff.sum(axis=(1, 2, 3))
    return np.sqrt(image_loss.mean() + eps)


if __name__ == "__main__":
    key = jax.random.PRNGKey(0)

    # Primary check: N=2, C=4, H=W=16 (total divisible by 16 -> no pad path).
    N, C, H, W = 2, 4, 16, 16
    k1, k2 = jax.random.split(key, 2)
    p_mask = jax.random.uniform(k1, (N, C, H, W), dtype=jnp.float32)
    gt_mask = jax.random.uniform(k2, (N, C, H, W), dtype=jnp.float32)

    out = alpha_loss_pallas(p_mask, gt_mask)
    out = jax.block_until_ready(out)
    ref = _reference(np.asarray(p_mask), np.asarray(gt_mask))
    np.testing.assert_allclose(np.asarray(out), ref, rtol=1e-5, atol=1e-5)

    # Secondary check: exercises the multi-step reduction + in-kernel tail mask
    # (d = 192 lanes, chunk capped at 128 -> 2 steps, last block partial).
    k3, k4 = jax.random.split(k2, 2)
    p2 = jax.random.uniform(k3, (3, 4, 16, 16), dtype=jnp.float32)
    g2 = jax.random.uniform(k4, (3, 4, 16, 16), dtype=jnp.float32)
    out2 = jax.block_until_ready(alpha_loss_pallas(p2, g2, max_chunk=128))
    ref2 = _reference(np.asarray(p2), np.asarray(g2))
    np.testing.assert_allclose(np.asarray(out2), ref2, rtol=1e-5, atol=1e-5)

    print("KERNEL_OK")
</pallas_src>

<mosaic_0001>
module attributes {stable_mosaic.version = 11 : i64} {
  func.func @_alpha_loss_kernel(%arg0: i32, %arg1: i32, %arg2: memref<8x128xf32, #tpu.memory_space<vmem>>, %arg3: memref<8x128xf32, #tpu.memory_space<vmem>>, %arg4: memref<1x1x128xf32, #tpu.memory_space<vmem>>, %arg5: memref<8x128xf32, #tpu.memory_space<vmem>>) attributes {dimension_semantics = [#tpu.dimension_semantics<parallel>, #tpu.dimension_semantics<arbitrary>], iteration_bounds = array<i64: 2, 1>, scalar_prefetch = 0 : i64, scratch_operands = 1 : i64, tpu.core_type = #tpu.core_type<tc>, window_params = [{transform_indices = @transform_0, window_bounds = array<i64: 8, 128>}, {transform_indices = @transform_1, window_bounds = array<i64: 8, 128>}, {transform_indices = @transform_2, window_bounds = array<i64: 1, 1, 128>}]} {
    %c0_i32 = arith.constant 0 : i32
    %0 = arith.cmpi eq, %arg1, %c0_i32 : i32
    %1 = arith.extui %0 : i1 to i32
    %c0_i32_0 = arith.constant 0 : i32
    %2 = arith.cmpi ne, %1, %c0_i32_0 : i32
    scf.if %2 {
      %cst = arith.constant 0.000000e+00 : f32
      %13 = vector.broadcast %cst : f32 to vector<8x128xf32>
      %c0_10 = arith.constant 0 : index
      %c0_11 = arith.constant 0 : index
      %14 = vector.load %arg5[%c0_10, %c0_11] : memref<8x128xf32, #tpu.memory_space<vmem>>, vector<8x128xf32>
      tpu.vector_store %arg5[%c0_10, %c0_11], %13 {strides = array<i32>} : memref<8x128xf32, #tpu.memory_space<vmem>>, vector<8x128xf32>,
    } else {
    }
    %c0 = arith.constant 0 : index
    %c0_1 = arith.constant 0 : index
    %3 = vector.load %arg3[%c0, %c0_1] : memref<8x128xf32, #tpu.memory_space<vmem>>, vector<8x128xf32>
    %c0_2 = arith.constant 0 : index
    %c0_3 = arith.constant 0 : index
    %4 = vector.load %arg2[%c0_2, %c0_3] : memref<8x128xf32, #tpu.memory_space<vmem>>, vector<8x128xf32>
    %5 = arith.subf %3, %4 : vector<8x128xf32>
    %6 = arith.mulf %5, %5 : vector<8x128xf32>
    %c0_4 = arith.constant 0 : index
    %c0_5 = arith.constant 0 : index
    %7 = vector.load %arg5[%c0_4, %c0_5] : memref<8x128xf32, #tpu.memory_space<vmem>>, vector<8x128xf32>
    %8 = arith.addf %7, %6 : vector<8x128xf32>
    %c0_6 = arith.constant 0 : index
    %c0_7 = arith.constant 0 : index
    %9 = vector.load %arg5[%c0_6, %c0_7] : memref<8x128xf32, #tpu.memory_space<vmem>>, vector<8x128xf32>
    tpu.vector_store %arg5[%c0_6, %c0_7], %8 {strides = array<i32>} : memref<8x128xf32, #tpu.memory_space<vmem>>, vector<8x128xf32>,
    %c0_i32_8 = arith.constant 0 : i32
    %10 = arith.cmpi eq, %arg1, %c0_i32_8 : i32
    %11 = arith.extui %10 : i1 to i32
    %c0_i32_9 = arith.constant 0 : i32
    %12 = arith.cmpi ne, %11, %c0_i32_9 : i32
    scf.if %12 {
      %c0_10 = arith.constant 0 : index
      %c0_11 = arith.constant 0 : index
      %13 = vector.load %arg5[%c0_10, %c0_11] : memref<8x128xf32, #tpu.memory_space<vmem>>, vector<8x128xf32>
      %14 = vector.shape_cast %13 : vector<8x128xf32> to vector<1x8x128xf32>
      %cst = arith.constant dense<0.000000e+00> : vector<1xf32>
      %15 = vector.multi_reduction <add>, %14, %cst [1, 2] : vector<1x8x128xf32> to vector<1xf32>
      %16 = vector.shape_cast %15 : vector<1xf32> to vector<1x1x1xf32>
      %17 = vector.extract %16[0, 0, 0] : f32 from vector<1x1x1xf32>
      %18 = vector.broadcast %17 : f32 to vector<1x1x128xf32>
      %c0_12 = arith.constant 0 : index
      %c0_13 = arith.constant 0 : index
      %c0_14 = arith.constant 0 : index
      %19 = vector.load %arg4[%c0_12, %c0_13, %c0_14] : memref<1x1x128xf32, #tpu.memory_space<vmem>>, vector<1x1x128xf32>
      tpu.vector_store %arg4[%c0_12, %c0_13, %c0_14], %18 {strides = array<i32>} : memref<1x1x128xf32, #tpu.memory_space<vmem>>, vector<1x1x128xf32>,
    } else {
    }
    return
  }
  func.func @transform_0(%arg0: i32, %arg1: i32) -> (i32, i32) {
    %c0_i32 = arith.constant 0 : i32
    return %arg0, %arg1 : i32, i32
  }
  func.func @transform_1(%arg0: i32, %arg1: i32) -> (i32, i32) {
    %c0_i32 = arith.constant 0 : i32
    return %arg0, %arg1 : i32, i32
  }
  func.func @transform_2(%arg0: i32, %arg1: i32) -> (i32, i32, i32) {
    %c0_i32 = arith.constant 0 : i32
    %c0_i32_0 = arith.constant 0 : i32
    %c0_i32_1 = arith.constant 0 : i32
    return %arg0, %c0_i32, %c0_i32_0 : i32, i32, i32
  }
}

</mosaic_0001>

<bundles_post_ra>
// kernel: tpu_custom_call.1
= control target key start
LH: loop header
LB: loop body
LE: loop exit
PB: predicated region body
PF: predicated region fallthrough
CT: control target
= control target key end

     0   :  { %7 = vsyncpa [#allocation4], 0  ;;  %s822_s0 = inlined_call_operand.hbm [shape: f32[16,128], index: 0, kind: input, shape index: {}]   ;;  %s823_s1 = inlined_call_operand.hbm [shape: f32[16,128], index: 1, kind: input, shape index: {}]   ;;  %s824_s2 = inlined_call_operand.hbm [shape: f32[2,1,128], index: 2, kind: output, shape index: {}]  }
   0x1   :  { %9 = vsyncpa [#allocation4 + $0x1], 0 }
   0x2   :  { %10 = vsyncpa [#allocation7], 0 }
   0x3   :  { %12 = vsyncpa [#allocation7 + $0x1], 0 }
   0x4   :  { %13 = vsyncpa [#allocation5], 0 }
   0x5   :  { %15 = vsyncpa [#allocation5 + $0x1], 0  ;;  %s601_s9 = smov 0   ;;  %s603_s10 = smov 0  }
   0x6   :  { %s605_s11 = smov 0   ;;  %s607_s12 = smov 0  }
   0x7   :  { %s609_s13 = smov 0   ;;  %s611_s14 = smov 0  }
   0x8 LB: > { %s352_s15 = sadd.s32 4294967295, %s581_s14   ;;  %s353_s16 = sadd.s32 4294967294, %s581_s14   ;;  %s581_s14 = sphi %s611_s14, %s21_s14   ;;  %s577_s13 = sphi %s609_s13, %s844_s13   ;;  %s573_s12 = sphi %s607_s12, %s843_s12   ;;  %s569_s11 = sphi %s605_s11, %s842_s11   ;;  %s565_s10 = sphi %s603_s10, %s841_s10   ;;  %s561_s9 = sphi %s601_s9, %s840_s9  }
   0x9   : > { %s33_s17 = sadd.s32 1, %s577_s13  ;;  %s42_s18 = sadd.s32 1, %s569_s11 }
   0xa   : > { %p35_p0 = scmp.ge.s32.totalorder %s33_s17, 2  ;;  %p49_p1 = scmp.ne.s32.totalorder %s569_s11, %s565_s10 }
   0xb   : > { %p50_p2 = scmp.eq.s32.totalorder %s581_s14, 0  ;;  %p55_p3 = scmp.ne.s32.totalorder %s565_s10, %s561_s9 }
   0xc   : > { %s846_s17 = smov (%p35_p0, %s33_s17), 0  ;;  %p56_p5 = scmp.eq.s32.totalorder %s352_s15, 0 }
   0xd   : > { %p642_p4 = por %p50_p2, %p49_p1  ;;  %s37_s20 = ssub.s32 %s577_s13, %s846_s17 }
   0xe   : > { %p107_p6 = scmp.eq.s32.totalorder %s352_s15, 1  ;;  %p40_p7 = scmp.eq.s32.totalorder %s37_s20, 0 }
   0xf   : > { %p648_p8 = por %p56_p5, %p55_p3  ;;  %p113_p10 = scmp.eq.s32.totalorder %s353_s16, 1 }
  0x10   : > { %p652_p9 = por %p107_p6, %p49_p1  ;;  %p385_p13 = scmp.lt.s32.totalorder %s581_s14, 2 }
  0x11   : > { %s828_s21 = scalar_select %p648_p8, 1, 0 }
  0x12   : > { %s829_s22 = scalar_select %p652_p9, 1, 0 }
  0x13   : > { %s657_s23 = scalar_select %p40_p7, %s569_s11, %s42_s18  }
  0x14   : > { %p659_p11 = por %p113_p10, %p55_p3  ;;  %s666_s25 = sand.u32 1, %s569_s11  }
  0x15   : > { %s356_s26 = sshll.u32 %s666_s25, 3  ;;  %s357_s27 = sshll.u32 %s577_s13, 7 }
  0x16   : > { %s830_s24 = scalar_select %p659_p11, 1, 0 }
  0x17   : > { %s675_s30 = scalar_lea.hbm %s822_s0, %s357_s27  ;;  %s137_s3 = scalar_lea.vmem [#allocation3], %s356_s26 }
  0x18   : > { %s145_s4 = sshll.u32 %s137_s3, 4  ;;  %p683_p0 = pnand %p385_p13, %p642_p4  ;;  %s679_s4 = int_to_ptr.vmem [resolvable:$true] %s145_s4 }
  0x19   : > { %s134_s6 = scalar_lea.sflag [#allocation4], %s666_s25  ;;  %s435_s7 = scalar_lea.hbm %s675_s30, 128 }
  0x1a   : > { %p436_p3 = scmp.ne.s32.totalorder %s675_s30, %s435_s7  ;;  %p437_p5 = pneg %p683_p0 }
  0x1b   : > { %s440_s16 = scalar_lea.hbm %s822_s0, 256  ;;  %p441_p4 = scmp.lt.u32.totalorder %s675_s30, %s822_s0 }
  0x1c   : > { %p438_p6 = pnand %p437_p5, %p436_p3  ;;  %p442_p10 = scmp.lt.u32.totalorder %s440_s16, %s435_s7 }
  0x1d   : > { %p444_p12 = scmp.lt.u32.totalorder %s435_s7, %s675_s30 }
  0x1e   : > { %p439_p7 = pneg %p438_p6  ;;  %p443_p13 = por %p442_p10, %p441_p4 }
  0x20   : > { %p445_p1 = por %p444_p12, %p443_p13 }
  0x22   : > { %p446_p2 = pnand %p445_p1, %p439_p7 }
  0x24   : > { %449 = shalt.err (!%p446_p2)
}
  0x25   : > { %s450_s20 = scalar_lea.vmem %s679_s4, 128  ;;  %s583_s28 = smov [#allocation3]  }
  0x26   : > { %p451_p3 = scmp.ne.s32.totalorder %s679_s4, %s450_s20  ;;  %s455_s29 = sshll.u32 %s583_s28, 4  ;;  %s456_s29 = int_to_ptr.vmem [resolvable:$false] %s455_s29 }
  0x27   : > { %s457_s3 = scalar_lea.vmem %s456_s29, 256  ;;  %p458_p9 = scmp.lt.s32.totalorder %s679_s4, %s456_s29 }
  0x28   : > { %p453_p6 = pnand %p451_p3, %p437_p5  ;;  %p459_p4 = scmp.lt.s32.totalorder %s457_s3, %s450_s20 }
  0x2a   : > { %p454_p11 = pneg %p453_p6  ;;  %p460_p10 = por %p459_p4, %p458_p9 }
  0x2c   : > { %p461_p12 = pnand %p460_p10, %p454_p11 }
  0x2e   : > { %464 = shalt.err (!%p461_p12)
}
  0x2f   : > { %377 = dma.hbm_to_vmem [thread:$0]  (!%p683_p0), %s675_s30, 128, %s679_s4, %s134_s6  }
  0x30   : > { %p832_p1 = scmp.lt.s32.totalorder %s581_s14, 3  ;;  %p833_p2 = scmp.ge.s32.totalorder %s581_s14, 1 }
  0x31   : > { %s728_s16 = scalar_lea.hbm %s823_s1, %s357_s27  ;;  %s156_s18 = scalar_lea.vmem [#allocation6], %s356_s26 }
  0x32   : > { %p719_p7 = pnand %p833_p2, %p832_p1  ;;  %s164_s19 = sshll.u32 %s156_s18, 4  ;;  %s165_s19 = int_to_ptr.vmem [resolvable:$true] %s164_s19 }
  0x33   : > { %s153_s30 = scalar_lea.sflag [#allocation7], %s666_s25  ;;  %s465_s4 = scalar_lea.hbm %s728_s16, 128 }
  0x34   : > { %s834_s7 = scalar_select %p719_p7, 1, 0 }
  0x35   : > { %p466_p9 = scmp.ne.s32.totalorder %s728_s16, %s465_s4  ;;  %s470_s27 = scalar_lea.hbm %s823_s1, 256 }
  0x36   : > { %p471_p3 = scmp.lt.u32.totalorder %s728_s16, %s823_s1  ;;  %p472_p6 = scmp.lt.u32.totalorder %s470_s27, %s465_s4 }
  0x37   : > { %p468_p11 = pnand %p466_p9, %p437_p5  ;;  %p474_p10 = scmp.lt.u32.totalorder %s465_s4, %s728_s16 }
  0x38   : > { %p473_p4 = por %p472_p6, %p471_p3 }
  0x39   : > { %p469_p13 = pneg %p468_p11 }
  0x3a   : > { %p475_p12 = por %p474_p10, %p473_p4 }
  0x3c   : > { %p476_p1 = pnand %p475_p12, %p469_p13 }
  0x3e   : > { %479 = shalt.err (!%p476_p1)
}
  0x3f   : > { %s480_s25 = scalar_lea.vmem %s165_s19, 128  ;;  %s584_s26 = smov [#allocation6]  }
  0x40   : > { %p481_p2 = scmp.ne.s32.totalorder %s165_s19, %s480_s25  ;;  %s485_s3 = sshll.u32 %s584_s26, 4  ;;  %s486_s3 = int_to_ptr.vmem [resolvable:$false] %s485_s3 }
  0x41   : > { %s487_s8 = scalar_lea.vmem %s486_s3, 256  ;;  %p488_p8 = scmp.lt.s32.totalorder %s165_s19, %s486_s3 }
  0x42   : > { %p483_p9 = pnand %p481_p2, %p437_p5  ;;  %p489_p7 = scmp.lt.s32.totalorder %s487_s8, %s480_s25 }
  0x44   : > { %p484_p11 = pneg %p483_p9  ;;  %p490_p3 = por %p489_p7, %p488_p8 }
  0x46   : > { %p491_p6 = pnand %p490_p3, %p484_p11 }
  0x48   : > { %494 = shalt.err (!%p491_p6)
}
  0x49   : > { %380 = dma.hbm_to_vmem [thread:$0]  (!%p683_p0), %s728_s16, 128, %s165_s19, %s153_s30  }
  0x4a   : > { %p835_p13 = scmp.ne.s32.totalorder %s834_s7, 0 }
  0x4b   : > { %s755_s15 = sand.u32 (!%p835_p13), 1, %s565_s10   ;;  %p836_p5 = scmp.ne.s32.totalorder (!%p835_p13), %s828_s21, 0 }
  0x4c   : > { %173 = sbr.rel (%p835_p13) target bundleno = 310 (0x136), region = 28  ;;  %s361_s18 = sshll.u32 (!%p835_p13), %s755_s15, 3 }
  0x4d   : > { %s176_s4 = scalar_lea.sflag (!%p835_p13), [#allocation4], %s755_s15  ;;  %s179_s6 = scalar_lea.vmem (!%p835_p13), [#allocation3], %s361_s18 }
  0x53   : > { %548 = dma.done.wait (%p836_p5), %s176_s4, 128  }
  0x54   : > { %550 = vsyncadd (%p836_p5), %s176_s4, 4294967168  ;;  %s185_s5 = scalar_lea.sflag [#allocation7], %s755_s15  ;;  %s188_s16 = scalar_lea.vmem [#allocation6], %s361_s18 }
  0x55   : > { %552 = dma.done.wait (%p836_p5), %s185_s5, 128  }
  0x56   : > { %554 = vsyncadd (%p836_p5), %s185_s5, 4294967168  ;;  %v218_v0 = vld [vmem:[%s188_s16] sm:$0xff]  ;;  %v219_v1 = vld [vmem:[%s179_s6] sm:$0xff]  ;;  %s212_s7 = scalar_lea.vmem [#allocation8], %s755_s15  ;;  %s363_s19 = sshll.u32 %s573_s12, 4 }
  0x57   : > { %v220_v2 = vsub.f32 %v218_v0, %v219_v1  ;;  %s253_s21 = sshll.u32 %s212_s7, 4  ;;  %s775_s28 = scalar_lea.hbm %s824_s2, %s363_s19  ;;  %s770_s21 = int_to_ptr.vmem [resolvable:$true] %s253_s21 }
  0x58   : > { %s241_s29 = scalar_lea.sflag [#allocation5], %s755_s15  ;;  %s495_s25 = scalar_lea.vmem %s770_s21, 16 }
  0x59   : > { %v221_v3 = vmul.f32 %v220_v2, %v220_v2  ;;  %p496_p8 = scmp.ne.s32.totalorder %s770_s21, %s495_s25  ;;  %p837_p0 = scmp.ne.s32.totalorder %s829_s22, 0 }
  0x5a   : > { %s585_s12 = smov [#allocation8]  }
  0x5b   : > { %229 = vadd.xlane.f32.xlu0 %v221_v3  ;;  %p497_p7 = pnand %p496_p8, %p837_p0  ;;  %s499_s26 = sshll.u32 %s585_s12, 4  ;;  %s500_s26 = int_to_ptr.vmem [resolvable:$false] %s499_s26 }
  0x5c   : > { %s501_s3 = scalar_lea.vmem %s500_s26, 32  ;;  %p502_p10 = scmp.lt.s32.totalorder %s770_s21, %s500_s26 }
  0x5d   : > { %p498_p4 = pneg %p497_p7  ;;  %p503_p12 = scmp.lt.s32.totalorder %s501_s3, %s495_s25 }
  0x5f   : > { %p504_p1 = por %p503_p12, %p502_p10 }
  0x61   : > { %p505_p2 = pnand %p504_p1, %p498_p4 }
  0xe8   : > { %v230_v4 = vpop.xlane.xlu0 %229 }
  0xe9   : > { %v231_v5 = vrot.slane %v230_v4, 4 }
  0xeb   : > { %v232_v6 = vadd.f32 %v231_v5, %v230_v4 }
  0xed   : > { %v233_v7 = vrot.slane %v232_v6, 2 }
  0xef   : > { %v234_v8 = vadd.f32 %v233_v7, %v232_v6 }
  0xf1   : > { %v235_v9 = vrot.slane %v234_v8, 1 }
  0xf3   : > { %v236_v10 = vadd.f32 %v235_v9, %v234_v8 }
  0xf5   : > { %366 = vpush %v236_v10 }
 0x126   : > { %s367_s30 = spop %366 }
 0x127   : > { %v238_v11 = vstv %s367_s30 }
 0x128   : > { %239 = vst [vmem:[%s212_s7] sm:$0x1] %v238_v11 }
 0x129   : > { %508 = shalt.err (!%p505_p2)
}
 0x12a   : > { %s509_s8 = scalar_lea.hbm %s775_s28, 16  ;;  %s513_s4 = scalar_lea.hbm %s824_s2, 32 }
 0x12b   : > { %p510_p9 = scmp.ne.s32.totalorder %s775_s28, %s509_s8  ;;  %p514_p6 = scmp.lt.u32.totalorder %s775_s28, %s824_s2 }
 0x12c   : > { %p515_p13 = scmp.lt.u32.totalorder %s513_s4, %s509_s8  ;;  %p517_p8 = scmp.lt.u32.totalorder %s509_s8, %s775_s28 }
 0x12d   : > { %p511_p11 = pnand %p510_p9, %p837_p0 }
 0x12e   : > { %p516_p5 = por %p515_p13, %p514_p6 }
 0x12f   : > { %p512_p3 = pneg %p511_p11 }
 0x130   : > { %p518_p7 = por %p517_p8, %p516_p5 }
 0x132   : > { %p519_p4 = pnand %p518_p7, %p512_p3 }
 0x134   : > { %522 = shalt.err (!%p519_p4)
}
 0x135   : > { %372 = dma.vmem_to_hbm [thread:$0]  (%p837_p0), %s770_s21, 16, %s775_s28, %s241_s29  }
 0x136 PF: > { %s265_s16 = sand.u32 1, %s561_s9   ;;  %p838_p10 = scmp.ne.s32.totalorder %s830_s24, 0 }
 0x137   : > { %p839_p12 = scmp.ge.s32.totalorder %s581_s14, 2  ;;  %s266_s7 = scalar_lea.sflag [#allocation5], %s265_s16 }
 0x139   : > { %p382_p1 = pnand %p839_p12, %p838_p10 }
 0x13b   : > { %556 = dma.done.wait (!%p382_p1), %s266_s7, 16  }
 0x13c   : > { %558 = vsyncadd (!%p382_p1), %s266_s7, 4294967280  ;;  %s21_s14 = sadd.s32 1, %s581_s14   ;;  %s840_s9 = smov %s565_s10 }
 0x13d   : > { %p18_p2 = scmp.ge.s32.totalorder %s21_s14, 4   ;;  %s841_s10 = smov %s569_s11 }
 0x13e   : > { %s842_s11 = smov %s657_s23  ;;  %s843_s12 = smov %s577_s13 }
 0x13f   : > { %s844_s13 = smov %s846_s17  ;;  %20 = sbr.rel (!%p18_p2) target bundleno = 8 (0x8), region = 94 }
 0x146   :  { %270 = vsyncpa [#allocation4], 1 }
 0x147   :  { %272 = vsyncpa [#allocation4 + $0x1], 1 }
 0x148   :  { %273 = vsyncpa [#allocation7], 1 }
 0x149   :  { %275 = vsyncpa [#allocation7 + $0x1], 1 }
 0x14a   :  { %276 = vsyncpa [#allocation5], 1 }
 0x14b   :  { %278 = vsyncpa [#allocation5 + $0x1], 1 }

</bundles_post_ra>
